<compile_context>
chip_gen: v5e
topology: v5e:2x2
jax: 0.10.0
libtpu: 0.0.40
codegen_flags: <defaults>
</compile_context>

<pallas_src>
import functools
import math

import jax
import jax.numpy as jnp
import numpy as np
from jax.experimental import pallas as pl
from jax.experimental.pallas import tpu as pltpu

# SVector index convention (deterministic, defined in-script)
ONE, X, Y, Z, XX, YY, ZZ, XY, XZ, YZ = range(10)

_LANES = 128
_CHUNK = 64          # rows per fold step: 8 vregs -> 8-way ILP per min/max chain
# 0.5 is neutral for both box constraints: relu(-0.5) = relu(0.5 - 1) = 0 and
# both relu-maxima are >= 0, so padded elements never change the result.
_NEUTRAL = 0.5


def _f_yoyo(s, cos, gamma_i):
    """Scalar inertia term.  Works on a jnp array or an SMEM ref.  Matches the
    PyTorch forward exactly, including the ELEMENTWISE `R * I_CoM * R.T`
    (the PyTorch `*`), whose diagonal is cos^2 * I_CoM[i, i]."""
    com = s[Z] * s[Z] / s[ONE]
    i_a = cos * cos * (s[YY] + s[ZZ] - com)      # cos^2 * (I00 - com)
    i_b = cos * cos * (s[XX] + s[ZZ] - com)      # cos^2 * (I11 - com)
    i_c = s[XX] + s[YY]
    return gamma_i * ((i_a / i_c) ** 2 + (i_b / i_c) ** 2)


def _loss_epilogue(s_ref, bmin, bmax, *, cos, sin, gamma_i, gamma_c, cw,
                   phi_w, beta_w):
    """~30 scalar ops; runs exactly once per loss evaluation."""
    # max(relu(-beta)) == relu(-min(beta));  max(relu(beta-1)) == relu(max-1)
    beta_c = (jnp.maximum(-bmin, 0.0) + jnp.maximum(bmax - 1.0, 0.0)) * beta_w
    f_top = gamma_c * s_ref[Z] * s_ref[Z] + _f_yoyo(s_ref, cos, gamma_i)
    vals = (s_ref[X] * s_ref[X], s_ref[Y] * s_ref[Y],
            s_ref[XZ] * s_ref[XZ], s_ref[YZ] * s_ref[YZ])
    weighted = sum(v * w for v, w in zip(vals, cw))
    phi_c = (cos * sin * (s_ref[XX] - s_ref[YY]) +
             (cos * cos - sin * sin) * s_ref[XY]) * phi_w
    return (f_top + weighted + phi_c + beta_c).astype(jnp.float32)


def _top_single_kernel(s_ref, beta_ref, out_ref, *, rows, cos, sin, gamma_i,
                       gamma_c, cw, phi_w, beta_w):
    """Grid-free kernel for rows <= tile_rows: no scratch, no pl.when."""
    if rows <= 2 * _CHUNK:
        # Tiny beta: whole-block reduce (<= 32 vregs), launch-overhead bound.
        b = beta_ref[...].astype(jnp.float32)
        bmin = jnp.min(b)
        bmax = jnp.max(b)
    else:
        # Chunked fold: 1 vld + 1 min + 1 max per vreg, O(1) live vregs.
        nfull = rows // _CHUNK
        rem = rows - nfull * _CHUNK
        mn = beta_ref[pl.ds(0, _CHUNK), :].astype(jnp.float32)
        mx = mn
        for i in range(1, nfull):
            piece = beta_ref[pl.ds(i * _CHUNK, _CHUNK), :].astype(jnp.float32)
            mn = jnp.minimum(mn, piece)
            mx = jnp.maximum(mx, piece)
        bmin = jnp.min(mn)
        bmax = jnp.max(mx)
        if rem:                                  # static tail (< 64 rows)
            tail = beta_ref[pl.ds(nfull * _CHUNK, rem), :].astype(jnp.float32)
            bmin = jnp.minimum(bmin, jnp.min(tail))
            bmax = jnp.maximum(bmax, jnp.max(tail))
    out_ref[0] = _loss_epilogue(s_ref, bmin, bmax, cos=cos, sin=sin,
                                gamma_i=gamma_i, gamma_c=gamma_c, cw=cw,
                                phi_w=phi_w, beta_w=beta_w)


def _top_grid_kernel(s_ref, beta_ref, out_ref, acc_min, acc_max, *, rows, tb,
                     num_tiles, cos, sin, gamma_i, gamma_c, cw, phi_w, beta_w):
    """Streaming kernel for rows > tile_rows (num_tiles >= 2)."""
    t = pl.program_id(0)

    # ---- init tiny resident accumulators once --------------------------------
    @pl.when(t == 0)
    def _():
        neutral = jnp.full((_CHUNK, _LANES), _NEUTRAL, jnp.float32)
        acc_min[...] = neutral
        acc_max[...] = neutral

    # ---- hot path: full tiles, pure unmasked VPU min/max ---------------------
    @pl.when(t < num_tiles - 1)
    def _():
        mn = acc_min[...]
        mx = acc_max[...]
        for i in range(tb // _CHUNK):
            piece = beta_ref[pl.ds(i * _CHUNK, _CHUNK), :].astype(jnp.float32)
            mn = jnp.minimum(mn, piece)
            mx = jnp.maximum(mx, piece)
        acc_min[...] = mn
        acc_max[...] = mx

    # ---- last tile: fold only the statically-valid region, then epilogue -----
    @pl.when(t == num_tiles - 1)
    def _():
        valid = rows - (num_tiles - 1) * tb      # static Python int, 1..tb
        nfull = valid // _CHUNK
        rem = valid - nfull * _CHUNK
        mn = acc_min[...]
        mx = acc_max[...]
        for i in range(nfull):
            piece = beta_ref[pl.ds(i * _CHUNK, _CHUNK), :].astype(jnp.float32)
            mn = jnp.minimum(mn, piece)
            mx = jnp.maximum(mx, piece)
        bmin = jnp.min(mn)                       # single cross-lane reduce
        bmax = jnp.max(mx)
        if rem:                                  # static ragged tail
            tail = beta_ref[pl.ds(nfull * _CHUNK, rem), :].astype(jnp.float32)
            bmin = jnp.minimum(bmin, jnp.min(tail))
            bmax = jnp.maximum(bmax, jnp.max(tail))
        out_ref[0] = _loss_epilogue(s_ref, bmin, bmax, cos=cos, sin=sin,
                                    gamma_i=gamma_i, gamma_c=gamma_c, cw=cw,
                                    phi_w=phi_w, beta_w=beta_w)


def spinit_loss(s, beta, *, phi, gamma_i, gamma_c, calc_type,
                constraints_weights, max_rows_per_tile=8192):
    """Pallas implementation of SpinItLoss.forward(model_outputs=s, beta)."""
    cos = float(math.cos(phi))
    sin = float(math.sin(phi))
    cw = tuple(float(w) for w in constraints_weights[:-2])
    phi_w = float(constraints_weights[-2])
    beta_w = float(constraints_weights[-1])

    s = jnp.asarray(s, jnp.float32)

    if calc_type == "yoyo":
        # ~10 scalar ops; inlined as plain jnp so XLA fuses it (perf review).
        return _f_yoyo(s, cos, float(gamma_i))

    beta = jnp.asarray(beta)
    if beta.dtype != jnp.bfloat16:               # stream bf16 natively; else f32
        beta = beta.astype(jnp.float32)
    beta = beta.reshape(-1)
    n = beta.shape[0]
    if n == 0:
        raise ValueError("beta must be non-empty for the box-constraint loss")

    rows = -(-n // _LANES)
    if n != rows * _LANES:
        # Only lane-unaligned beta pays this one pad copy (value 0.5 is
        # neutral for both box constraints).  Lane-aligned beta: no HBM copy.
        beta = jnp.pad(beta, (0, rows * _LANES - n), constant_values=_NEUTRAL)
    beta2d = beta.reshape(rows, _LANES)

    n_elems = rows * _LANES
    cost = pl.CostEstimate(flops=2 * n_elems + 64, transcendentals=0,
                           bytes_accessed=int(n_elems * beta2d.dtype.itemsize) + 44)

    scalar_kwargs = dict(cos=cos, sin=sin, gamma_i=float(gamma_i),
                         gamma_c=float(gamma_c), cw=cw, phi_w=phi_w,
                         beta_w=beta_w)

    tile_rows = max(_CHUNK, (int(max_rows_per_tile) // _CHUNK) * _CHUNK)

    if rows <= tile_rows:
        # -------- single-block specialization: no grid, no scratch ------------
        kernel = functools.partial(_top_single_kernel, rows=rows, **scalar_kwargs)
        out = pl.pallas_call(
            kernel,
            out_shape=jax.ShapeDtypeStruct((1,), jnp.float32),
            in_specs=[pl.BlockSpec(memory_space=pltpu.MemorySpace.SMEM),   # s (10,)
                      pl.BlockSpec(memory_space=pltpu.MemorySpace.VMEM)],  # beta
            out_specs=pl.BlockSpec(memory_space=pltpu.MemorySpace.SMEM),
            cost_estimate=cost,
        )(s, beta2d)
        return out[0]

    # -------- streaming path: 4 MiB row-tiles, tiny carried accumulators ------
    tb = tile_rows
    num_tiles = -(-rows // tb)
    kernel = functools.partial(_top_grid_kernel, rows=rows, tb=tb,
                               num_tiles=num_tiles, **scalar_kwargs)
    out = pl.pallas_call(
        kernel,
        out_shape=jax.ShapeDtypeStruct((1,), jnp.float32),
        grid=(num_tiles,),
        in_specs=[
            pl.BlockSpec(memory_space=pltpu.MemorySpace.SMEM),    # s (10,)
            pl.BlockSpec((tb, _LANES), lambda t: (t, 0)),         # beta row-tile
        ],
        out_specs=pl.BlockSpec(memory_space=pltpu.MemorySpace.SMEM),
        scratch_shapes=[pltpu.VMEM((_CHUNK, _LANES), jnp.float32),  # running min
                        pltpu.VMEM((_CHUNK, _LANES), jnp.float32)], # running max
        compiler_params=pltpu.CompilerParams(
            dimension_semantics=("arbitrary",),        # carried accumulators
            vmem_limit_bytes=32 * 1024 * 1024),
        cost_estimate=cost,
    )(s, beta2d)
    return out[0]


def _reference_loss(s, beta, phi, gamma_i, gamma_c, calc_type, cw_full):
    """Pure numpy reference reproducing the PyTorch forward semantics."""
    c, si = np.cos(phi), np.sin(phi)
    s = np.asarray(s, np.float64)
    beta = np.asarray(beta, np.float64)
    com = s[Z] ** 2 / s[ONE]
    I_a = c * c * (s[YY] + s[ZZ] - com)
    I_b = c * c * (s[XX] + s[ZZ] - com)
    I_c = s[XX] + s[YY]
    f_yoyo = gamma_i * ((I_a / I_c) ** 2 + (I_b / I_c) ** 2)
    if calc_type == "yoyo":
        return f_yoyo
    f_top = gamma_c * s[Z] ** 2 + f_yoyo
    vals = [s[X] ** 2, s[Y] ** 2, s[XZ] ** 2, s[YZ] ** 2]
    weighted = sum(v * w for v, w in zip(vals, cw_full[:-2]))
    phi_c = (c * si * (s[XX] - s[YY]) + (c * c - si * si) * s[XY]) * cw_full[-2]
    beta_c = (np.maximum(-beta, 0).max() + np.maximum(beta - 1, 0).max()) * cw_full[-1]
    return f_top + weighted + phi_c + beta_c


if __name__ == "__main__":
    key = jax.random.PRNGKey(0)
    k_s, k_b1, k_b2, k_b3 = jax.random.split(key, 4)

    phi = 0.3
    gamma_i = 1.5
    gamma_c = 0.7
    constraints_weights = [0.1, 0.2, 0.3, 0.4, 0.5, 0.6]

    s = jax.random.uniform(k_s, (10,), minval=0.5, maxval=2.0, dtype=jnp.float32)

    def check(beta, calc_type, **kw):
        out = spinit_loss(s, beta, phi=phi, gamma_i=gamma_i, gamma_c=gamma_c,
                          calc_type=calc_type,
                          constraints_weights=constraints_weights, **kw)
        out = jax.block_until_ready(out)
        ref = _reference_loss(np.asarray(s), np.asarray(beta), phi, gamma_i,
                              gamma_c, calc_type, constraints_weights)
        np.testing.assert_allclose(float(out), float(ref), rtol=1e-4, atol=1e-5)

    # 1) small lane-ragged beta (3000 = 23*128 + 56) -> single-block kernel.
    beta1 = jax.random.uniform(k_b1, (3000,), minval=-0.2, maxval=1.2,
                               dtype=jnp.float32)
    check(beta1, "top")
    check(beta1, "yoyo")

    # 2) streaming grid path with a ragged final row-tile (small tile size
    #    override keeps the test data tiny while exercising the multi-tile
    #    kernel, the carried accumulators and the static tail fold).
    beta2 = jax.random.uniform(k_b2, (100_000,), minval=-0.3, maxval=1.3,
                               dtype=jnp.float32)
    check(beta2, "top", max_rows_per_tile=64)

    # 3) streaming grid path, exact multiple of the tile (no tail chunk).
    beta3 = jax.random.uniform(k_b3, (128 * 128,), minval=-0.1, maxval=1.1,
                               dtype=jnp.float32)
    check(beta3, "top", max_rows_per_tile=64)

    print("KERNEL_OK")
</pallas_src>

<mosaic_0001>
module attributes {stable_mosaic.version = 11 : i64} {
  func.func @_top_single_kernel(%arg0: memref<10xf32, #tpu.memory_space<smem>>, %arg1: memref<24x128xf32, #tpu.memory_space<vmem>>, %arg2: memref<1xf32, #tpu.memory_space<smem>>) attributes {dimension_semantics = [], scalar_prefetch = 0 : i64, scratch_operands = 0 : i64, tpu.core_type = #tpu.core_type<tc>} {
    %c0 = arith.constant 0 : index
    %c0_0 = arith.constant 0 : index
    %0 = vector.load %arg1[%c0, %c0_0] : memref<24x128xf32, #tpu.memory_space<vmem>>, vector<24x128xf32>
    %1 = vector.shape_cast %0 : vector<24x128xf32> to vector<1x24x128xf32>
    %cst = arith.constant dense<0x7F800000> : vector<1xf32>
    %2 = vector.multi_reduction <minimumf>, %1, %cst [1, 2] : vector<1x24x128xf32> to vector<1xf32>
    %3 = vector.shape_cast %2 : vector<1xf32> to vector<1x1x1xf32>
    %4 = vector.extract %3[0, 0, 0] : f32 from vector<1x1x1xf32>
    %5 = vector.shape_cast %0 : vector<24x128xf32> to vector<1x24x128xf32>
    %cst_1 = arith.constant dense<0xFF800000> : vector<1xf32>
    %6 = vector.multi_reduction <maximumf>, %5, %cst_1 [1, 2] : vector<1x24x128xf32> to vector<1xf32>
    %7 = vector.shape_cast %6 : vector<1xf32> to vector<1x1x1xf32>
    %8 = vector.extract %7[0, 0, 0] : f32 from vector<1x1x1xf32>
    %cst_2 = arith.constant 0.000000e+00 : f32
    %9 = arith.subf %cst_2, %4 : f32
    %cst_3 = arith.constant 0.000000e+00 : f32
    %10 = arith.maximumf %9, %cst_3 : f32
    %cst_4 = arith.constant 1.000000e+00 : f32
    %11 = arith.subf %8, %cst_4 : f32
    %cst_5 = arith.constant 0.000000e+00 : f32
    %12 = arith.maximumf %11, %cst_5 : f32
    %13 = arith.addf %10, %12 : f32
    %cst_6 = arith.constant 6.000000e-01 : f32
    %14 = arith.mulf %13, %cst_6 : f32
    %c3 = arith.constant 3 : index
    %15 = memref.load %arg0[%c3] : memref<10xf32, #tpu.memory_space<smem>>
    %cst_7 = arith.constant 0.699999988 : f32
    %16 = arith.mulf %cst_7, %15 : f32
    %c3_8 = arith.constant 3 : index
    %17 = memref.load %arg0[%c3_8] : memref<10xf32, #tpu.memory_space<smem>>
    %18 = arith.mulf %16, %17 : f32
    %c3_9 = arith.constant 3 : index
    %19 = memref.load %arg0[%c3_9] : memref<10xf32, #tpu.memory_space<smem>>
    %c3_10 = arith.constant 3 : index
    %20 = memref.load %arg0[%c3_10] : memref<10xf32, #tpu.memory_space<smem>>
    %21 = arith.mulf %19, %20 : f32
    %c0_11 = arith.constant 0 : index
    %22 = memref.load %arg0[%c0_11] : memref<10xf32, #tpu.memory_space<smem>>
    %23 = arith.divf %21, %22 : f32
    %c5 = arith.constant 5 : index
    %24 = memref.load %arg0[%c5] : memref<10xf32, #tpu.memory_space<smem>>
    %c6 = arith.constant 6 : index
    %25 = memref.load %arg0[%c6] : memref<10xf32, #tpu.memory_space<smem>>
    %26 = arith.addf %24, %25 : f32
    %27 = arith.subf %26, %23 : f32
    %cst_12 = arith.constant 0.91266781 : f32
    %28 = arith.mulf %cst_12, %27 : f32
    %c4 = arith.constant 4 : index
    %29 = memref.load %arg0[%c4] : memref<10xf32, #tpu.memory_space<smem>>
    %c6_13 = arith.constant 6 : index
    %30 = memref.load %arg0[%c6_13] : memref<10xf32, #tpu.memory_space<smem>>
    %31 = arith.addf %29, %30 : f32
    %32 = arith.subf %31, %23 : f32
    %cst_14 = arith.constant 0.91266781 : f32
    %33 = arith.mulf %cst_14, %32 : f32
    %c4_15 = arith.constant 4 : index
    %34 = memref.load %arg0[%c4_15] : memref<10xf32, #tpu.memory_space<smem>>
    %c5_16 = arith.constant 5 : index
    %35 = memref.load %arg0[%c5_16] : memref<10xf32, #tpu.memory_space<smem>>
    %36 = arith.addf %34, %35 : f32
    %37 = arith.divf %28, %36 : f32
    %38 = arith.mulf %37, %37 : f32
    %39 = arith.divf %33, %36 : f32
    %40 = arith.mulf %39, %39 : f32
    %41 = arith.addf %38, %40 : f32
    %cst_17 = arith.constant 1.500000e+00 : f32
    %42 = arith.mulf %cst_17, %41 : f32
    %43 = arith.addf %18, %42 : f32
    %c1 = arith.constant 1 : index
    %44 = memref.load %arg0[%c1] : memref<10xf32, #tpu.memory_space<smem>>
    %c1_18 = arith.constant 1 : index
    %45 = memref.load %arg0[%c1_18] : memref<10xf32, #tpu.memory_space<smem>>
    %46 = arith.mulf %44, %45 : f32
    %c2 = arith.constant 2 : index
    %47 = memref.load %arg0[%c2] : memref<10xf32, #tpu.memory_space<smem>>
    %c2_19 = arith.constant 2 : index
    %48 = memref.load %arg0[%c2_19] : memref<10xf32, #tpu.memory_space<smem>>
    %49 = arith.mulf %47, %48 : f32
    %c8 = arith.constant 8 : index
    %50 = memref.load %arg0[%c8] : memref<10xf32, #tpu.memory_space<smem>>
    %c8_20 = arith.constant 8 : index
    %51 = memref.load %arg0[%c8_20] : memref<10xf32, #tpu.memory_space<smem>>
    %52 = arith.mulf %50, %51 : f32
    %c9 = arith.constant 9 : index
    %53 = memref.load %arg0[%c9] : memref<10xf32, #tpu.memory_space<smem>>
    %c9_21 = arith.constant 9 : index
    %54 = memref.load %arg0[%c9_21] : memref<10xf32, #tpu.memory_space<smem>>
    %55 = arith.mulf %53, %54 : f32
    %cst_22 = arith.constant 1.000000e-01 : f32
    %56 = arith.mulf %46, %cst_22 : f32
    %cst_23 = arith.constant 0.000000e+00 : f32
    %57 = arith.addf %cst_23, %56 : f32
    %cst_24 = arith.constant 2.000000e-01 : f32
    %58 = arith.mulf %49, %cst_24 : f32
    %59 = arith.addf %57, %58 : f32
    %cst_25 = arith.constant 3.000000e-01 : f32
    %60 = arith.mulf %52, %cst_25 : f32
    %61 = arith.addf %59, %60 : f32
    %cst_26 = arith.constant 4.000000e-01 : f32
    %62 = arith.mulf %55, %cst_26 : f32
    %63 = arith.addf %61, %62 : f32
    %c4_27 = arith.constant 4 : index
    %64 = memref.load %arg0[%c4_27] : memref<10xf32, #tpu.memory_space<smem>>
    %c5_28 = arith.constant 5 : index
    %65 = memref.load %arg0[%c5_28] : memref<10xf32, #tpu.memory_space<smem>>
    %66 = arith.subf %64, %65 : f32
    %cst_29 = arith.constant 0.282321244 : f32
    %67 = arith.mulf %cst_29, %66 : f32
    %c7 = arith.constant 7 : index
    %68 = memref.load %arg0[%c7] : memref<10xf32, #tpu.memory_space<smem>>
    %cst_30 = arith.constant 0.825335621 : f32
    %69 = arith.mulf %cst_30, %68 : f32
    %70 = arith.addf %67, %69 : f32
    %cst_31 = arith.constant 5.000000e-01 : f32
    %71 = arith.mulf %70, %cst_31 : f32
    %72 = arith.addf %43, %63 : f32
    %73 = arith.addf %72, %71 : f32
    %74 = arith.addf %73, %14 : f32
    %c0_32 = arith.constant 0 : index
    %75 = memref.load %arg2[%c0_32] : memref<1xf32, #tpu.memory_space<smem>>
    memref.store %74, %arg2[%c0_32] : memref<1xf32, #tpu.memory_space<smem>>
    return
  }
}

</mosaic_0001>

<bundles_post_ra>
// kernel: tpu_custom_call.1
= control target key start
LH: loop header
LB: loop body
LE: loop exit
PB: predicated region body
PF: predicated region fallthrough
CT: control target
= control target key end

     0   :  { %s323_s0 = inlined_call_operand.hbm [shape: f32[10], index: 0, kind: input, shape index: {}]   ;;  %s324_s1 = inlined_call_operand.hbm [shape: f32[24,128], index: 1, kind: input, shape index: {}]   ;;  %s325_s2 = inlined_call_operand.hbm [shape: f32[1], index: 2, kind: output, shape index: {}]  }
   0x1   :  { %326 = sst [smem:[#allocation11_spill]] %s325_s2 }
   0x2   :  { %7 = vsyncpa [#allocation4], 0 }
   0x3   :  { %8 = vsyncpa [#allocation3], 0 }
   0x4   :  { %9 = vsyncpa [#allocation5], 0  ;;  %s15_s11 = sshll.u32 %s323_s0, 4  ;;  %s23_s14 = sshll.u32 %s324_s1, 4  ;;  %s16_s11 = int_to_ptr.hbm [resolvable:$true] %s15_s11  ;;  %s24_s14 = int_to_ptr.hbm [resolvable:$true] %s23_s14 }
   0x5   :  { %s269_s15 = smov [#allocation2]   ;;  %s270_s16 = smov [#allocation6]  }
   0x6   :  { %18 = dma.hbm_to_smem %s16_s11, 16, %s269_s15, [#allocation4]  }
   0x7   :  { %s25_s17 = sshll.u32 %s270_s16, 4  ;;  %s271_s18 = smov 128   ;;  %s26_s17 = int_to_ptr.vmem [resolvable:$true] %s25_s17 }
   0x8   :  { %s272_s19 = smov 8  }
   0x9   :  { %31 = dma.hbm_to_vmem [thread:$0]  %s24_s14, 384, %s26_s17, [#allocation3], %s271_s18, %s271_s18, %s272_s19  }
   0xa   :  { %263 = dma.done.wait [#allocation4], 16  }
   0xb   :  { %264 = vsyncadd [#allocation4], 4294967280 }
   0xc   :  { %265 = dma.done.wait [#allocation3], 384  }
   0xd   :  { %266 = vsyncadd [#allocation3], 4294966912 }
   0xe   :  { %40 = sfence }
   0xf   :  { %v41_v0 = vld [vmem:[#allocation6] sm:$0xff]  ;;  %v42_v1 = vld [vmem:[#allocation6 + $0x8] sm:$0xff]  ;;  %v43_v2 = vld [vmem:[#allocation6 + $0x10] sm:$0xff]  ;;  %s296_s0 = sld [smem:[#allocation2 + $0x5]] }
  0x10   :  { %v44_v3 = vmin.f32 %v41_v0, %v42_v1  ;;  %v55_v5 = vmax.f32 %v41_v0, %v42_v1  ;;  %s298_s1 = sld [smem:[#allocation2 + $0x4]] }
  0x11   :  { %s76_s20 = sld [smem:[#allocation2]] }
  0x12   :  { %v45_v4 = vmin.f32 %v44_v3, %v43_v2  ;;  %v56_v6 = vmax.f32 %v55_v5, %v43_v2  ;;  %s302_s22 = sld [smem:[#allocation2 + $0x3]] }
  0x13   :  { %s192_s23 = sld [smem:[#allocation2 + $0x1]] }
  0x14   :  { %46 = vmin.xlane.f32.xlu0 %v45_v4  ;;  %s193_s24 = sld [smem:[#allocation2 + $0x2]] }
  0x15   :  { %s194_s25 = sld [smem:[#allocation2 + $0x8]] }
  0x16   :  { %s103_s21 = sadd.f32 %s298_s1, %s296_s0 }
  0x17   :  { %v77_v7 = vstv %s76_s20  ;;  %s190_s26 = sld [smem:[#allocation2 + $0x6]] }
  0x18   :  { %v104_v8 = vstv %s103_s21  ;;  %211 = vrcp.f32 %v77_v7  ;;  %vm83_vm0 = vweird.f32 %v77_v7  ;;  %v89_v25 = vand.u32 2147483648, %v77_v7  ;;  %s195_s27 = sld [smem:[#allocation2 + $0x9]]  ;;  %s75_s28 = smul.f32 %s302_s22, %s302_s22 }
  0x19   :  { %213 = vrcp.f32 %v104_v8  ;;  %vm110_vm2 = vweird.f32 %v104_v8  ;;  %v87_v29 = vand.u32 2147483647, %v77_v7  ;;  %v116_v30 = vand.u32 2147483648, %v104_v8  ;;  %s144_s29 = smul.f32 %s192_s23, %s192_s23  ;;  %s307_s6 = sld [smem:[#allocation2 + $0x7]] }
  0x1a   :  { %v114_v33 = vand.u32 2147483647, %v104_v8  ;;  %v90_v35 = vor.u32 1.1754944e-38, %v89_v25  ;;  %s146_s3 = smul.f32 %s193_s24, %s193_s24  ;;  %s159_s10 = ssub.f32 %s298_s1, %s296_s0 }
  0x1b   :  { %vm88_vm6 = vcmp.eq.f32.partialorder %v87_v29, 8.507059e+37  ;;  %v117_v37 = vor.u32 1.1754944e-38, %v116_v30  ;;  %s148_s4 = smul.f32 %s194_s25, %s194_s25 }
  0x1c   :  { %57 = vmax.xlane.f32.xlu0 %v56_v6  ;;  %vm115_vm7 = vcmp.eq.f32.partialorder %v114_v33, 8.507059e+37  ;;  %s151_s5 = smul.f32 0.1, %s144_s29 }
  0x1d   :  { %s96_s7 = sadd.f32 %s190_s26, %s296_s0  ;;  %s153_s12 = smul.f32 0.2, %s146_s3 }
  0x1e   :  { %v212_v9 = vpop.eup %211  ;;  %s150_s8 = smul.f32 %s195_s27, %s195_s27  ;;  %s100_s16 = sadd.f32 %s298_s1, %s190_s26 }
  0x1f   :  { %v214_v10 = vpop.eup %213  ;;  %v79_v12 = vmul.f32 %v212_v9, %v77_v7  ;;  %vm84_vm1 = vweird.f32 %v212_v9  ;;  %s155_s14 = smul.f32 0.3, %s148_s4  ;;  %s154_s25 = sadd.f32 %s153_s12, %s151_s5 }
  0x20   :  { %v106_v14 = vmul.f32 %v214_v10, %v104_v8  ;;  %vm111_vm3 = vweird.f32 %v214_v10  ;;  %vm85_vm4 = vmor %vm83_vm0, %vm84_vm1  ;;  %s157_s17 = smul.f32 0.4, %s150_s8  ;;  %s273_s8 = smov 0.0  }
  0x21   :  { %v80_v16 = vsub.f32 1.0, %v79_v12  ;;  %vm112_vm5 = vmor %vm110_vm2, %vm111_vm3  ;;  %s160_s18 = smul.f32 0.28232124, %s159_s10  ;;  %s156_s2 = sadd.f32 %s155_s14, %s154_s25 }
  0x22   :  { %v107_v18 = vsub.f32 1.0, %v106_v14  ;;  %s162_s20 = smul.f32 0.8253356, %s307_s6 }
  0x23   :  { %v81_v21 = vmul.f32 %v212_v9, %v80_v16  ;;  %s158_s6 = sadd.f32 %s157_s17, %s156_s2 }
  0x24   :  { %v108_v24 = vmul.f32 %v214_v10, %v107_v18  ;;  %s163_s26 = sadd.f32 %s162_s20, %s160_s18 }
  0x25   :  { %v82_v28 = vadd.f32 %v212_v9, %v81_v21 }
  0x26   :  { %v109_v32 = vadd.f32 %v214_v10, %v108_v24  ;;  %s164_s12 = smul.f32 0.5, %s163_s26 }
  0x27   :  { %v86_v36 = vsel %vm85_vm4, %v212_v9, %v82_v28 }
  0x28   :  { %v113_v39 = vsel %vm112_vm5, %v214_v10, %v109_v32  ;;  %v91_v41 = vsel %vm88_vm6, %v90_v35, %v86_v36 }
  0x29   :  { %v118_v42 = vsel %vm115_vm7, %v117_v37, %v113_v39 }
  0x87   :  { %v47_v11 = vpop.xlane.xlu0 %46 }
  0x88   :  { %v48_v13 = vrot.slane %v47_v11, 4 }
  0x8a   :  { %v49_v15 = vmin.f32 %v47_v11, %v48_v13 }
  0x8c   :  { %v50_v17 = vrot.slane %v49_v15, 2 }
  0x8e   :  { %v51_v19 = vmin.f32 %v49_v15, %v50_v17 }
  0x8f   :  { %v58_v20 = vpop.xlane.xlu0 %57 }
  0x90   :  { %v59_v22 = vrot.slane %v58_v20, 4  ;;  %v52_v23 = vrot.slane %v51_v19, 1 }
  0x92   :  { %v60_v26 = vmax.f32 %v58_v20, %v59_v22  ;;  %v53_v27 = vmin.f32 %v51_v19, %v52_v23 }
  0x94   :  { %v61_v31 = vrot.slane %v60_v26, 2  ;;  %197 = vpush %v53_v27 }
  0x96   :  { %v62_v34 = vmax.f32 %v60_v26, %v61_v31 }
  0x98   :  { %v63_v38 = vrot.slane %v62_v34, 1 }
  0x9a   :  { %v64_v40 = vmax.f32 %v62_v34, %v63_v38 }
  0x9c   :  { %199 = vpush %v64_v40 }
  0x9d   :  { %201 = vpush %v91_v41 }
  0x9e   :  { %203 = vpush %v118_v42 }
  0xc5   :  { %s310_s9 = spop %197 }
  0xc6   :  { %s66_s4 = ssub.f32 0.0, %s310_s9 }
  0xcd   :  { %s200_s11 = spop %199 }
  0xce   :  { %s202_s13 = spop %201  ;;  %s187_s0 = sadd.f32 -1.0, %s200_s11 }
  0xcf   :  { %s93_s15 = smul.f32 %s202_s13, %s75_s28  ;;  %s204_s23 = spop %203 }
  0xd0   :  { %s327_s13 = smul.f32 0.7, %s302_s22  ;;  %s69_s10 = smax.f32 %s273_s8, %s187_s0 }
  0xd1   :  { %s97_s19 = ssub.f32 %s96_s7, %s93_s15 }
  0xd2   :  { %s101_s21 = ssub.f32 %s100_s16, %s93_s15  ;;  %s74_s1 = smul.f32 %s302_s22, %s327_s13 }
  0xd3   :  { %s98_s24 = smul.f32 0.9126678, %s97_s19  ;;  %s67_s15 = smax.f32 %s273_s8, %s66_s4 }
  0xd4   :  { %s102_s27 = smul.f32 0.9126678, %s101_s21  ;;  %s70_s19 = sadd.f32 %s69_s10, %s67_s15 }
  0xd5   :  { %s120_s29 = smul.f32 %s204_s23, %s98_s24  ;;  %s274_s22 = smov [#allocation7]  }
  0xd6   :  { %s138_s30 = smul.f32 %s204_s23, %s102_s27  ;;  %s328_s23 = sld [smem:[#allocation11_spill]] }
  0xd7   :  { %s121_s3 = smul.f32 %s120_s29, %s120_s29 }
  0xd8   :  { %s139_s28 = smul.f32 %s138_s30, %s138_s30 }
  0xd9   :  { %s71_s14 = smul.f32 0.6, %s70_s19 }
  0xda   :  { %s140_s7 = sadd.f32 %s139_s28, %s121_s3 }
  0xdc   :  { %s141_s16 = smul.f32 1.5, %s140_s7  ;;  %s175_s27 = sshll.u32 %s328_s23, 4  ;;  %s176_s27 = int_to_ptr.hbm [resolvable:$true] %s175_s27 }
  0xde   :  { %s142_s5 = sadd.f32 %s141_s16, %s74_s1 }
  0xe0   :  { %s165_s21 = sadd.f32 %s158_s6, %s142_s5 }
  0xe2   :  { %s166_s9 = sadd.f32 %s165_s21, %s164_s12 }
  0xe4   :  { %s167_s30 = sadd.f32 %s166_s9, %s71_s14 }
  0xe6   :  { %169 = sst [smem:[#allocation7]] %s167_s30 }
  0xe7   :  { %178 = dma.smem_to_hbm %s274_s22, 16, %s176_s27, [#allocation5]  }
  0xe8   :  { %267 = dma.done.wait [#allocation5], 16  }
  0xe9   :  { %268 = vsyncadd [#allocation5], 4294967280 }
  0xea   :  { %183 = sfence }
  0xeb   :  { %184 = vsyncpa [#allocation3], 1 }
  0xec   :  { %185 = vsyncpa [#allocation4], 1 }
  0xed   :  { %186 = vsyncpa [#allocation5], 1 }

</bundles_post_ra>
